<compile_context>
chip_gen: v6e
topology: v6e:2x2x1
jax: 0.10.0
libtpu: 0.0.40
codegen_flags: <defaults>
</compile_context>

<pallas_src>
import jax
import jax.numpy as jnp
from jax.experimental import pallas as pl
from jax.experimental.pallas import tpu as pltpu

FEAT_DIM = 2048     # InceptionV3 pooled feature size (fc replaced by Identity)
C_MID = 64          # surrogate conv output channels
KH = KW = 3         # conv kernel
STRIDE = 2          # conv stride (like InceptionV3 stem Conv2d_1a_3x3)


def _round_up(x, m):
    return ((x + m - 1) // m) * m


# ---------------------------------------------------------------------------
# Pallas kernel.  Per grid step (b, p):
#   h(TB*PT, C)  = relu(patches(TB*PT, K) @ W1(K, C) + b1)     MXU (f32 acc) + VPU
#   acc(TB, C)  += sum over the PT patch rows of h              pooled-sum reduction
# At the last P step:
#   pooled = (acc - n_pad * relu(b1)) / P                       remove zero-pad rows
#   out(TB, 2048) = pooled @ W2(C, 2048) + b2                   batched projection
# ---------------------------------------------------------------------------
def _make_feature_kernel(p_true, n_pad, tb, pt):
    def kernel(p_ref, w1_ref, b1_ref, w2_ref, b2_ref, o_ref, acc_ref):
        p_idx = pl.program_id(1)

        @pl.when(p_idx == 0)
        def _():
            acc_ref[...] = jnp.zeros_like(acc_ref)

        patches = p_ref[...]                                   # (TB, PT, K) bf16
        k = patches.shape[-1]
        flat = patches.reshape(tb * pt, k)                     # (TB*PT, K)
        h = jnp.dot(flat, w1_ref[...],
                    preferred_element_type=jnp.float32)        # (TB*PT, C) f32
        h = jnp.maximum(h + b1_ref[...], 0.0)                  # conv bias + ReLU (f32)
        acc_ref[...] += jnp.sum(h.reshape(tb, pt, -1), axis=1)  # (TB, C)

        @pl.when(p_idx == pl.num_programs(1) - 1)
        def _():
            pooled_sum = acc_ref[...]                          # (TB, C) f32
            if n_pad:
                # Each zero-padded patch row contributed exactly relu(b1); remove them.
                pooled_sum = pooled_sum - float(n_pad) * jnp.maximum(b1_ref[...], 0.0)
            pooled = pooled_sum * (1.0 / float(p_true))        # global average pool
            feat = jnp.dot(pooled.astype(w2_ref.dtype), w2_ref[...],
                           preferred_element_type=jnp.float32) + b2_ref[...]
            o_ref[...] = feat.astype(o_ref.dtype)              # lane-dense (TB, 2048)

    return kernel


def _extract_features_pallas(patches, w1, b1, w2, b2, *, tb, pt, p_true):
    """patches: (Bpad, Ppad, K) bf16 -> (Bpad, FEAT_DIM) f32."""
    bpad, ppad, k = patches.shape
    c = w1.shape[1]
    f = w2.shape[1]
    n_pad = ppad - p_true
    grid = (bpad // tb, ppad // pt)

    kernel = _make_feature_kernel(p_true, n_pad, tb, pt)

    return pl.pallas_call(
        kernel,
        out_shape=jax.ShapeDtypeStruct((bpad, f), jnp.float32),
        grid_spec=pltpu.PrefetchScalarGridSpec(
            num_scalar_prefetch=0,
            grid=grid,
            in_specs=[
                pl.BlockSpec((tb, pt, k), lambda b, p: (b, p, 0)),   # patches
                pl.BlockSpec((k, c), lambda b, p: (0, 0)),           # W1 (grid-invariant)
                pl.BlockSpec((1, c), lambda b, p: (0, 0)),           # b1
                pl.BlockSpec((c, f), lambda b, p: (0, 0)),           # W2
                pl.BlockSpec((1, f), lambda b, p: (0, 0)),           # b2
            ],
            # Same output block across the P axis => accumulator stays resident,
            # written once at the last P step (P3 pattern).
            out_specs=pl.BlockSpec((tb, f), lambda b, p: (b, 0)),
            scratch_shapes=[pltpu.VMEM((tb, c), jnp.float32)],
        ),
        compiler_params=pltpu.CompilerParams(
            dimension_semantics=("parallel", "arbitrary")),
    )(patches, w1, b1, w2, b2)


# ---------------------------------------------------------------------------
# Glue: NCHW->NHWC, im2col, greyscale folding, padding
# ---------------------------------------------------------------------------
def _im2col(x_nhwc, kh, kw, sh, sw):
    B, H, W, C = x_nhwc.shape
    oh = (H - kh) // sh + 1
    ow = (W - kw) // sw + 1
    cols = []
    for i in range(kh):
        for j in range(kw):
            cols.append(x_nhwc[:, i:i + sh * oh:sh, j:j + sw * ow:sw, :])
    patches = jnp.concatenate(cols, axis=-1)               # (B, oh, ow, kh*kw*C)
    return patches.reshape(B, oh * ow, kh * kw * C)


def init_params(key):
    k1, k2, k3, k4 = jax.random.split(key, 4)
    kdim = KH * KW * 3                                      # layout: [pos * 3 + channel]
    w1 = jax.random.normal(k1, (kdim, C_MID), jnp.float32) * (1.0 / jnp.sqrt(kdim))
    b1 = jax.random.normal(k2, (1, C_MID), jnp.float32) * 0.01
    w2 = jax.random.normal(k3, (C_MID, FEAT_DIM), jnp.float32) * (1.0 / jnp.sqrt(C_MID))
    b2 = jax.random.normal(k4, (1, FEAT_DIM), jnp.float32) * 0.01
    return w1, b1, w2, b2


def image_feature_extractor(x, params, *, tb=8, pt=512):
    """Mirror of ImageFeatureExtractor.forward.

    x: (N, T, H, W) greyscale, (N, T, 1, H, W) single-channel, or (N, T, 3, H, W) RGB.
    returns: (N, T, 2048) float32 features.

    tb (images per grid step, multiple of 8) and pt (patch-rows per reduction
    step, multiple of 16) must be re-derived per TPU generation: keep the
    double-buffered working set well inside VMEM (64 MiB v7x, 128 MiB v5e/v6e).
    """
    assert tb % 8 == 0, "tb must be a multiple of 8 (output sublane tiling)"
    w1, b1, w2, b2 = params
    grey = (x.ndim < 5) or (x.shape[-3] == 1)
    if x.ndim < 5:
        x = x[..., None, :, :]                              # (N, T, 1, H, W)
    n, t = x.shape[:2]
    x = x.reshape((-1,) + x.shape[2:])                      # (B, Cin, H, W)  NCHW
    x = jnp.transpose(x, (0, 2, 3, 1)).astype(jnp.float32)  # -> NHWC

    if grey:
        # Fold grey->RGB replication into W1: replicated patches @ W1 ==
        # grey patches @ (W1_r + W1_g + W1_b).  K: 27 -> 9, 3x less HBM traffic.
        x = x[..., :1]
        w1_use = w1.reshape(KH * KW, 3, -1).sum(axis=1)     # (9, C_MID)
    else:
        w1_use = w1                                          # (27, C_MID)

    patches = _im2col(x, KH, KW, STRIDE, STRIDE)             # (B, P, K) f32
    b_sz, p_sz, _ = patches.shape

    # Tile sizes: pt a multiple of 16 (bf16 sublane packing); pad P and B.
    pt = _round_up(min(pt, _round_up(p_sz, 16)), 16)
    p_pad = _round_up(p_sz, pt)
    b_pad = _round_up(b_sz, tb)
    patches = patches.astype(jnp.bfloat16)
    patches = jnp.pad(patches, ((0, b_pad - b_sz), (0, p_pad - p_sz), (0, 0)))

    feats = _extract_features_pallas(
        patches, w1_use.astype(jnp.bfloat16), b1, w2.astype(jnp.bfloat16), b2,
        tb=tb, pt=pt, p_true=p_sz)                           # (Bpad, 2048) f32
    return feats[:b_sz].reshape(n, t, FEAT_DIM)


def _reference_features(x, params):
    """Pure-JAX f32 reference with the original RGB-replication semantics."""
    w1, b1, w2, b2 = params
    if x.ndim < 5 or x.shape[-3] == 1:
        if x.ndim < 5:
            x = x[..., None, :, :]
        x = jnp.repeat(x, 3, axis=-3)
    n, t = x.shape[:2]
    x = x.reshape((-1,) + x.shape[2:])
    x = jnp.transpose(x, (0, 2, 3, 1)).astype(jnp.float32)
    p = _im2col(x, KH, KW, STRIDE, STRIDE)                   # (B, P, 27)
    h = jnp.maximum(jnp.einsum('bpk,kc->bpc', p, w1) + b1, 0.0)
    pooled = h.mean(axis=1)
    feat = pooled @ w2 + b2
    return feat.reshape(n, t, FEAT_DIM)


if __name__ == "__main__":
    key = jax.random.PRNGKey(0)
    pkey, xkey = jax.random.split(key)
    params = init_params(pkey)

    # small greyscale video batch: (batch=2, seq=8, H=16, W=16) -> B=16 images, P=49 patches
    x = jax.random.normal(xkey, (2, 8, 16, 16), jnp.float32)

    # tb=8 -> 2 batch steps; pt=16 -> 4-step P reduction (exercises the accumulator path).
    feats = image_feature_extractor(x, params, tb=8, pt=16)
    feats = jax.block_until_ready(feats)
    assert feats.shape == (2, 8, FEAT_DIM), feats.shape
    assert feats.dtype == jnp.float32

    ref = _reference_features(x, params)
    max_err = float(jnp.max(jnp.abs(feats - ref)))
    assert jnp.allclose(feats, ref, rtol=5e-2, atol=5e-2), max_err

    print("KERNEL_OK")
</pallas_src>

<mosaic_0001>
module attributes {stable_mosaic.version = 11 : i64} {
  func.func @kernel(%arg0: i32, %arg1: i32, %arg2: memref<8x16x9xbf16, #tpu.memory_space<vmem>>, %arg3: memref<9x64xbf16, #tpu.memory_space<vmem>>, %arg4: memref<1x64xf32, #tpu.memory_space<vmem>>, %arg5: memref<64x2048xbf16, #tpu.memory_space<vmem>>, %arg6: memref<1x2048xf32, #tpu.memory_space<vmem>>, %arg7: memref<8x2048xf32, #tpu.memory_space<vmem>>, %arg8: memref<8x64xf32, #tpu.memory_space<vmem>>) attributes {dimension_semantics = [#tpu.dimension_semantics<parallel>, #tpu.dimension_semantics<arbitrary>], iteration_bounds = array<i64: 2, 4>, scalar_prefetch = 0 : i64, scratch_operands = 1 : i64, tpu.core_type = #tpu.core_type<tc>, window_params = [{transform_indices = @transform_0, window_bounds = array<i64: 8, 16, 9>}, {pipeline_mode = #tpu.pipeline_mode<synchronous>, transform_indices = @transform_1, window_bounds = array<i64: 9, 64>}, {pipeline_mode = #tpu.pipeline_mode<synchronous>, transform_indices = @transform_2, window_bounds = array<i64: 1, 64>}, {pipeline_mode = #tpu.pipeline_mode<synchronous>, transform_indices = @transform_3, window_bounds = array<i64: 64, 2048>}, {pipeline_mode = #tpu.pipeline_mode<synchronous>, transform_indices = @transform_4, window_bounds = array<i64: 1, 2048>}, {transform_indices = @transform_5, window_bounds = array<i64: 8, 2048>}]} {
    %c0_i32 = arith.constant 0 : i32
    %0 = arith.cmpi eq, %arg1, %c0_i32 : i32
    %1 = arith.extui %0 : i1 to i32
    %c0_i32_0 = arith.constant 0 : i32
    %2 = arith.cmpi ne, %1, %c0_i32_0 : i32
    scf.if %2 {
      %cst_14 = arith.constant 0.000000e+00 : f32
      %20 = vector.broadcast %cst_14 : f32 to vector<8x64xf32>
      %c0_15 = arith.constant 0 : index
      %c0_16 = arith.constant 0 : index
      %21 = vector.load %arg8[%c0_15, %c0_16] : memref<8x64xf32, #tpu.memory_space<vmem>>, vector<8x64xf32>
      tpu.vector_store %arg8[%c0_15, %c0_16], %20 {strides = array<i32>} : memref<8x64xf32, #tpu.memory_space<vmem>>, vector<8x64xf32>,
    } else {
    }
    %c0 = arith.constant 0 : index
    %c0_1 = arith.constant 0 : index
    %c0_2 = arith.constant 0 : index
    %3 = vector.load %arg2[%c0, %c0_1, %c0_2] : memref<8x16x9xbf16, #tpu.memory_space<vmem>>, vector<8x16x9xbf16>
    %4 = vector.shape_cast %3 : vector<8x16x9xbf16> to vector<128x9xbf16>
    %c0_3 = arith.constant 0 : index
    %c0_4 = arith.constant 0 : index
    %5 = vector.load %arg3[%c0_3, %c0_4] : memref<9x64xbf16, #tpu.memory_space<vmem>>, vector<9x64xbf16>
    %cst = arith.constant dense<0.000000e+00> : vector<128x64xf32>
    %6 = tpu.matmul %4, %5, %cst {dimension_numbers = #tpu.dot_dimension_numbers<[1], [0], [0], [1], [0, 0, 1, 1], [], []>} : vector<128x9xbf16>, vector<9x64xbf16>, vector<128x64xf32> -> vector<128x64xf32>
    %c0_5 = arith.constant 0 : index
    %c0_6 = arith.constant 0 : index
    %7 = vector.load %arg4[%c0_5, %c0_6] : memref<1x64xf32, #tpu.memory_space<vmem>>, vector<1x64xf32>
    %8 = vector.broadcast %7 : vector<1x64xf32> to vector<128x64xf32>
    %9 = arith.addf %6, %8 : vector<128x64xf32>
    %cst_7 = arith.constant 0.000000e+00 : f32
    %10 = vector.broadcast %cst_7 : f32 to vector<128x64xf32>
    %11 = arith.maximumf %9, %10 : vector<128x64xf32>
    %c0_8 = arith.constant 0 : index
    %c0_9 = arith.constant 0 : index
    %12 = vector.load %arg8[%c0_8, %c0_9] : memref<8x64xf32, #tpu.memory_space<vmem>>, vector<8x64xf32>
    %13 = vector.shape_cast %11 : vector<128x64xf32> to vector<8x16x64xf32>
    %cst_10 = arith.constant dense<0.000000e+00> : vector<8x64xf32>
    %14 = vector.multi_reduction <add>, %13, %cst_10 [1] : vector<8x16x64xf32> to vector<8x64xf32>
    %15 = arith.addf %12, %14 : vector<8x64xf32>
    %c0_11 = arith.constant 0 : index
    %c0_12 = arith.constant 0 : index
    %16 = vector.load %arg8[%c0_11, %c0_12] : memref<8x64xf32, #tpu.memory_space<vmem>>, vector<8x64xf32>
    tpu.vector_store %arg8[%c0_11, %c0_12], %15 {strides = array<i32>} : memref<8x64xf32, #tpu.memory_space<vmem>>, vector<8x64xf32>,
    %c3_i32 = arith.constant 3 : i32
    %17 = arith.cmpi eq, %arg1, %c3_i32 : i32
    %18 = arith.extui %17 : i1 to i32
    %c0_i32_13 = arith.constant 0 : i32
    %19 = arith.cmpi ne, %18, %c0_i32_13 : i32
    scf.if %19 {
      %c0_14 = arith.constant 0 : index
      %c0_15 = arith.constant 0 : index
      %20 = vector.load %arg8[%c0_14, %c0_15] : memref<8x64xf32, #tpu.memory_space<vmem>>, vector<8x64xf32>
      %c0_16 = arith.constant 0 : index
      %c0_17 = arith.constant 0 : index
      %21 = vector.load %arg4[%c0_16, %c0_17] : memref<1x64xf32, #tpu.memory_space<vmem>>, vector<1x64xf32>
      %cst_18 = arith.constant 0.000000e+00 : f32
      %22 = vector.broadcast %cst_18 : f32 to vector<1x64xf32>
      %23 = arith.maximumf %21, %22 : vector<1x64xf32>
      %cst_19 = arith.constant 1.500000e+01 : f32
      %24 = vector.broadcast %cst_19 : f32 to vector<1x64xf32>
      %25 = arith.mulf %24, %23 : vector<1x64xf32>
      %26 = vector.broadcast %25 : vector<1x64xf32> to vector<8x64xf32>
      %27 = arith.subf %20, %26 : vector<8x64xf32>
      %cst_20 = arith.constant 0.0204081628 : f32
      %28 = vector.broadcast %cst_20 : f32 to vector<8x64xf32>
      %29 = arith.mulf %27, %28 : vector<8x64xf32>
      %30 = arith.truncf %29 : vector<8x64xf32> to vector<8x64xbf16>
      %c0_21 = arith.constant 0 : index
      %c0_22 = arith.constant 0 : index
      %31 = vector.load %arg5[%c0_21, %c0_22] : memref<64x2048xbf16, #tpu.memory_space<vmem>>, vector<64x2048xbf16>
      %cst_23 = arith.constant dense<0.000000e+00> : vector<8x2048xf32>
      %32 = tpu.matmul %30, %31, %cst_23 {dimension_numbers = #tpu.dot_dimension_numbers<[1], [0], [0], [1], [0, 0, 1, 1], [], []>} : vector<8x64xbf16>, vector<64x2048xbf16>, vector<8x2048xf32> -> vector<8x2048xf32>
      %c0_24 = arith.constant 0 : index
      %c0_25 = arith.constant 0 : index
      %33 = vector.load %arg6[%c0_24, %c0_25] : memref<1x2048xf32, #tpu.memory_space<vmem>>, vector<1x2048xf32>
      %34 = vector.broadcast %33 : vector<1x2048xf32> to vector<8x2048xf32>
      %35 = arith.addf %32, %34 : vector<8x2048xf32>
      %c0_26 = arith.constant 0 : index
      %c0_27 = arith.constant 0 : index
      %36 = vector.load %arg7[%c0_26, %c0_27] : memref<8x2048xf32, #tpu.memory_space<vmem>>, vector<8x2048xf32>
      tpu.vector_store %arg7[%c0_26, %c0_27], %35 {strides = array<i32>} : memref<8x2048xf32, #tpu.memory_space<vmem>>, vector<8x2048xf32>,
    } else {
    }
    return
  }
  func.func @transform_0(%arg0: i32, %arg1: i32) -> (i32, i32, i32) {
    %c0_i32 = arith.constant 0 : i32
    %c0_i32_0 = arith.constant 0 : i32
    return %arg0, %arg1, %c0_i32 : i32, i32, i32
  }
  func.func @transform_1(%arg0: i32, %arg1: i32) -> (i32, i32) {
    %c0_i32 = arith.constant 0 : i32
    %c0_i32_0 = arith.constant 0 : i32
    %c0_i32_1 = arith.constant 0 : i32
    return %c0_i32, %c0_i32_0 : i32, i32
  }
  func.func @transform_2(%arg0: i32, %arg1: i32) -> (i32, i32) {
    %c0_i32 = arith.constant 0 : i32
    %c0_i32_0 = arith.constant 0 : i32
    %c0_i32_1 = arith.constant 0 : i32
    return %c0_i32, %c0_i32_0 : i32, i32
  }
  func.func @transform_3(%arg0: i32, %arg1: i32) -> (i32, i32) {
    %c0_i32 = arith.constant 0 : i32
    %c0_i32_0 = arith.constant 0 : i32
    %c0_i32_1 = arith.constant 0 : i32
    return %c0_i32, %c0_i32_0 : i32, i32
  }
  func.func @transform_4(%arg0: i32, %arg1: i32) -> (i32, i32) {
    %c0_i32 = arith.constant 0 : i32
    %c0_i32_0 = arith.constant 0 : i32
    %c0_i32_1 = arith.constant 0 : i32
    return %c0_i32, %c0_i32_0 : i32, i32
  }
  func.func @transform_5(%arg0: i32, %arg1: i32) -> (i32, i32) {
    %c0_i32 = arith.constant 0 : i32
    %c0_i32_0 = arith.constant 0 : i32
    return %arg0, %c0_i32 : i32, i32
  }
}

</mosaic_0001>

<bundles_post_ra>
// kernel: tpu_custom_call.1
= control target key start
LH: loop header
LB: loop body
LE: loop exit
PB: predicated region body
PF: predicated region fallthrough
CT: control target
= control target key end

     0   :  { %10 = vsyncpa [#allocation5], 0  ;;  %s2455_s0 = inlined_call_operand.vmem [shape: bf16[16,64,9], index: 0, kind: input, shape index: {}]   ;;  %s2456_s1 = inlined_call_operand.vmem [shape: bf16[9,64], index: 1, kind: input, shape index: {}]   ;;  %s2457_s2 = inlined_call_operand.vmem [shape: f32[1,64], index: 2, kind: input, shape index: {}]   ;;  %s2458_s3 = inlined_call_operand.vmem [shape: bf16[64,2048], index: 3, kind: input, shape index: {}]   ;;  %s2459_s4 = inlined_call_operand.vmem [shape: f32[1,2048], index: 4, kind: input, shape index: {}]   ;;  %s2460_s5 = inlined_call_operand.hbm [shape: f32[16,2048], index: 5, kind: output, shape index: {}]  }
   0x1   :  { %12 = vsyncpa [#allocation5 + $0x1], 0  ;;  %s1976_s18 = smov 0   ;;  %s1978_s19 = smov 0  }
   0x2   :  { %s1980_s20 = smov 0   ;;  %s1982_s21 = smov 0  }
   0x3   :  { %s1984_s22 = smov 0   ;;  %s1986_s23 = smov 0  }
   0x4   :  { %s1988_s24 = smov 0   ;;  %s1990_s25 = smov 0  }
   0x5   :  { %s1992_s26 = smov 0   ;;  %s1994_s27 = smov 0  }
   0x6 LB: > { %s1593_s28 = sadd.s32 4294967295, %s1940_s27   ;;  %s1594_s29 = sadd.s32 4294967294, %s1940_s27   ;;  %s1940_s27 = sphi %s1994_s27, %s18_s27   ;;  %s1936_s26 = sphi %s1992_s26, %s2478_s26   ;;  %s1932_s25 = sphi %s1990_s25, %s2477_s25   ;;  %s1928_s24 = sphi %s1988_s24, %s2476_s24   ;;  %s1924_s23 = sphi %s1986_s23, %s2475_s23   ;;  %s1920_s22 = sphi %s1984_s22, %s2474_s22   ;;  %s1916_s21 = sphi %s1982_s21, %s2473_s21   ;;  %s1912_s20 = sphi %s1980_s20, %s2472_s20   ;;  %s1908_s19 = sphi %s1978_s19, %s2471_s19   ;;  %s1904_s18 = sphi %s1976_s18, %s2470_s18  }
   0x7   : > { %s27_s30 = sadd.s32 1, %s1932_s25  ;;  %s30_s6 = sadd.s32 1, %s1936_s26 }
   0x8   : > { %p28_p0 = scmp.ge.s32.totalorder %s27_s30, 4  ;;  %s39_s7 = sadd.s32 1, %s1920_s22 }
   0x9   : > { %p46_p1 = scmp.ne.s32.totalorder %s1920_s22, %s1916_s21  ;;  %p47_p2 = scmp.eq.s32.totalorder %s1940_s27, 0 }
   0xa   : > { %s2480_s30 = smov (%p28_p0, %s27_s30), 0  ;;  %s2482_s6 = smov (!%p28_p0, %s30_s6), %s1936_s26 }
   0xb   : > { %2463 = sst [smem:[#allocation7_spill]] %s2480_s30  ;;  %s35_s8 = ssub.s32 %s1932_s25, %s2480_s30 }
   0xc   : > { %p2039_p3 = por %p47_p2, %p46_p1  ;;  %p32_p4 = scmp.ge.s32.totalorder %s2482_s6, 2 }
   0xd   : > { %s149_s10 = sadd.s32 1, %s1912_s20  ;;  %p159_p5 = scmp.ne.s32.totalorder %s1912_s20, %s1908_s19 }
   0xe   : > { %p160_p6 = scmp.eq.s32.totalorder %s1593_s28, 7  ;;  %s2484_s6 = smov (%p32_p4, %s2482_s6), 0 }
   0xf   : > { %2465 = sst [smem:[#allocation8_spill]] %s2484_s6  ;;  %p165_p8 = scmp.ne.s32.totalorder %s1908_s19, %s1904_s18 }
  0x10   : > { %p2048_p7 = por %p160_p6, %p159_p5  ;;  %s34_s12 = ssub.s32 %s1936_s26, %s2484_s6 }
  0x11   : > { %p166_p9 = scmp.eq.s32.totalorder %s1594_s29, 7  ;;  %s36_s13 = sor.u32 %s35_s8, %s34_s12 }
  0x12   : > { %p147_p10 = scmp.eq.s32.totalorder %s34_s12, 0  ;;  %p37_p11 = scmp.eq.s32.totalorder %s36_s13, 0 }
  0x13   : > { %p2056_p12 = por %p166_p9, %p165_p8  ;;  %p1596_p13 = scmp.ge.s32.totalorder %s1940_s27, 8 }
  0x14   : > { %s2061_s15 = scalar_select %p147_p10, %s1912_s20, %s149_s10  }
  0x15   : > { %s2064_s16 = scalar_select %p37_p11, %s1920_s22, %s39_s7  }
  0x16   : > { %194 = sbr.rel (%p1596_p13) target bundleno = 42 (0x2a), region = 32 }
  0x1b   : > { %197 = sbr.rel (!%p2039_p3) target bundleno = 42 (0x2a), region = 36  ;;  %s199_s17 = sand.u32 (%p2039_p3), 1, %s1920_s22  }
  0x1c   : > { %s1599_s28 = sshll.u32 (%p2039_p3), %s1932_s25, 1  ;;  %s1597_s29 = sshll.u32 (%p2039_p3), %s199_s17, 6 }
  0x1d   : > { %s1702_s8 = sshll.u32 (%p2039_p3), %s1936_s26, 6  ;;  %s201_s30 = scalar_lea.vmem (%p2039_p3), [#allocation3], %s1597_s29 }
  0x1e   : > { %s205_s12 = sadd.s32 (%p2039_p3), %s1702_s8, %s1599_s28 }
  0x1f   : > { %s1601_s13 = sshll.u32 (%p2039_p3), %s205_s12, 2 }
  0x20   : > { %s207_s7 = scalar_lea.vmem %s2455_s0, %s1601_s13 }
  0x21   : > { %v224_v0 = vld [vmem:[%s207_s7] sm:$0xff]  }
  0x22   : > { %v228_v1 = vld [vmem:[%s207_s7 + $0x20] sm:$0xff]   ;;  %225 = vst [vmem:[%s201_s30] sm:$0xff] %v224_v0  }
  0x23   : > { %v232_v2 = vld [vmem:[%s207_s7 + $0x40] sm:$0xff]   ;;  %229 = vst [vmem:[%s201_s30 + $0x8] sm:$0xff] %v228_v1  }
  0x24   : > { %233 = vst [vmem:[%s201_s30 + $0x10] sm:$0xff] %v232_v2   ;;  %v236_v3 = vld [vmem:[%s207_s7 + $0x60] sm:$0xff]  }
  0x25   : > { %v240_v4 = vld [vmem:[%s207_s7 + $0x80] sm:$0xff]   ;;  %237 = vst [vmem:[%s201_s30 + $0x18] sm:$0xff] %v236_v3  }
  0x26   : > { %v244_v5 = vld [vmem:[%s207_s7 + $0xa0] sm:$0xff]   ;;  %241 = vst [vmem:[%s201_s30 + $0x20] sm:$0xff] %v240_v4  }
  0x27   : > { %245 = vst [vmem:[%s201_s30 + $0x28] sm:$0xff] %v244_v5   ;;  %v248_v6 = vld [vmem:[%s207_s7 + $0xc0] sm:$0xff]  }
  0x28   : > { %v252_v7 = vld [vmem:[%s207_s7 + $0xe0] sm:$0xff]   ;;  %249 = vst [vmem:[%s201_s30 + $0x30] sm:$0xff] %v248_v6  }
  0x29   : > { %253 = vst [vmem:[%s201_s30 + $0x38] sm:$0xff] %v252_v7  }
  0x2a PF: > { %p1602_p0 = scmp.ge.s32.totalorder %s1940_s27, 1  ;;  %p310_p1 = scmp.lt.s32.totalorder %s1940_s27, 9 }
  0x2c   : > { %p311_p2 = pnand %p1602_p0, %p310_p1 }
  0x2d   : > { %s317_s6 = sand.u32 (!%p311_p2), 1, %s1916_s21   ;;  %s341_s9 = sand.u32 (!%p311_p2), 1, %s1908_s19  }
  0x2e   : > { %314 = sbr.rel (%p311_p2) target bundleno = 593 (0x251), region = 77  ;;  %s1603_s17 = sshll.u32 (!%p311_p2), %s317_s6, 6 }
  0x2f   : > { %s1604_s28 = sshll.u32 (!%p311_p2), %s341_s9, 7  ;;  %s2081_s29 = scalar_lea.vmem (!%p311_p2), [#allocation3], %s1603_s17 }
  0x30   : > { %s2083_s8 = scalar_lea.vmem (!%p311_p2), [#allocation4], %s1604_s28  ;;  %p1605_p3 = scmp.ne.s32.totalorder (!%p311_p2), %s1924_s23, 0 }
  0x33   : > { %350 = sbr.rel (%p1605_p3) target bundleno = 58 (0x3a), region = 85 }
  0x38   : > { %vm351_vm0 = vcmask 523264   ;;  %v1942_v8 = vmov 0.0  }
  0x39   : > { %352 = vst.msk [vmem:[#allocation2] sm:$0xff] %vm351_vm0, %v1942_v8 }
  0x3a PF: > { %v1823_v9 = vld [vmem:[%s2456_s1] sm:$0x1f]   ;;  %vm448_vm1 = vcmask 1043456   ;;  %vm449_vm2 = vcmask 1044480   ;;  %v1824_v10 = vld [vmem:[%s2081_s29] sm:$0xff]   ;;  %v1943_v11 = vmov 65535  }
  0x3b   : > { %v450_v12 = vsel %vm448_vm1, 4294967295, %v1943_v11  ;;  %vm423_vm3 = vcmask 72704   ;;  %v1825_v14 = vld [vmem:[%s2081_s29 + $0x20] sm:$0xff]   ;;  %v1826_v16 = vld [vmem:[%s2081_s29 + $0x8] sm:$0xff]   ;;  %v1828_v18 = vld [vmem:[%s2081_s29 + $0x10] sm:$0xff]   ;;  %vm569_vm4 = vcmask 523264  }
  0x3c   : > { %v451_v13 = vsel %vm449_vm2, %v450_v12, 0  ;;  %1715 = vmatprep.mubr.msk.bf16.mxu0 %vm423_vm3, %v1824_v10  ;;  %1723 = vmatprep.mubr.msk.bf16.mxu1 %vm423_vm3, %v1825_v14  ;;  %v1827_v17 = vld [vmem:[%s2081_s29 + $0x28] sm:$0xff]   ;;  %v1829_v19 = vld [vmem:[%s2081_s29 + $0x30] sm:$0xff]   ;;  %v1830_v20 = vld [vmem:[%s2081_s29 + $0x18] sm:$0xff]   ;;  %vm650_vm5 = vcmask 1041409   ;;  %vm652_vm6 = vcmask 1042434  }
  0x3d   : > { %v453_v15 = vand.u32 %v1823_v9, %v451_v13  ;;  %v1831_v21 = vld [vmem:[%s2081_s29 + $0x38] sm:$0xff]   ;;  %vm654_vm7 = vcmask 1043459   ;;  %vm656_vm8 = vcmask 1044484   ;;  %vm658_vm9 = vcmask 1045509   ;;  %p1624_p4 = scmp.ne.s32.totalorder %s1924_s23, 3 }
  0x3e   : > { %v2108_v22 = vld [vmem:[%s2457_s2] ss:$0 sm:$0xff]  ;;  %vm660_vm10 = vcmask 1046534   ;;  %vm662_vm11 = vcmask 1047559  }
  0x3f   : > { %1713 = vmatprep.subr.bf16.mxu0 %v453_v15  ;;  %1731 = vmatprep.subr.bf16.mxu1 %v453_v15 }
  0x40   : > { %1714 = vmatpush3.bf16.msra.mxu0 %v453_v15  ;;  %1732 = vmatpush3.bf16.msra.mxu1 %v453_v15 }
  0x43   : > { %1716 = vmatmul.mubr.msk.bf16.vlgmr.msra.gmra.mxu0 %vm423_vm3, %v1826_v16  ;;  %1724 = vmatmul.mubr.msk.bf16.vlgmr.msra.gmra.mxu1 %vm423_vm3, %v1827_v17 }
  0x44   : > { %1719 = vmatprep.mubr.msk.bf16.mxu0 %vm423_vm3, %v1828_v18  ;;  %1727 = vmatprep.mubr.msk.bf16.mxu1 %vm423_vm3, %v1829_v19 }
  0x4b   : > { %1720 = vmatmul.mubr.msk.bf16.gmra.mxu0 %vm423_vm3, %v1830_v20  ;;  %1728 = vmatmul.mubr.msk.bf16.gmra.mxu1 %vm423_vm3, %v1831_v21 }
 0x103   : > { %v1717_v23 = vpop.f32.mrf.mxu0  ;;  %v1725_v24 = vpop.f32.mrf.mxu1 }
 0x104   : > { %v498_v25 = vadd.f32 %v1717_v23, %v2108_v22  ;;  %v530_v26 = vadd.f32 %v1725_v24, %v2108_v22 }
 0x105   : > { %v489_v27 = vpop.f32.mrf.mxu0  ;;  %v521_v28 = vpop.f32.mrf.mxu1 }
 0x106   : > { %v490_v29 = vadd.f32 %v2108_v22, %v489_v27  ;;  %v522_v30 = vadd.f32 %v2108_v22, %v521_v28  ;;  %v554_v33 = vmax.f32 %v498_v25, 0.0  ;;  %v562_v34 = vmax.f32 %v530_v26, 0.0 }
 0x107   : > { %v1718_v31 = vpop.f32.mrf.mxu0  ;;  %v1726_v32 = vpop.f32.mrf.mxu1 }
 0x108   : > { %v552_v35 = vmax.f32 %v490_v29, 0.0  ;;  %v501_v36 = vadd.f32 %v1718_v31, %v2108_v22  ;;  %v533_v37 = vadd.f32 %v1726_v32, %v2108_v22  ;;  %v560_v42 = vmax.f32 %v522_v30, 0.0 }
 0x109   : > { %v492_v38 = vpop.f32.mrf.mxu0  ;;  %v524_v39 = vpop.f32.mrf.mxu1  ;;  %v579_v47 = vsel %vm569_vm4, %v554_v33, 0.0  ;;  %v615_v48 = vsel %vm569_vm4, %v562_v34, 0.0 }
 0x10a   : > { %v493_v40 = vadd.f32 %v2108_v22, %v492_v38  ;;  %v525_v41 = vadd.f32 %v2108_v22, %v524_v39  ;;  %v555_v43 = vmax.f32 %v501_v36, 0.0  ;;  %v563_v44 = vmax.f32 %v533_v37, 0.0 }
 0x10b   : > { %v1721_v45 = vpop.f32.mrf.mxu0  ;;  %v1729_v46 = vpop.f32.mrf.mxu1  ;;  %v570_v51 = vsel %vm569_vm4, %v552_v35, 0.0  ;;  %v606_v61 = vsel %vm569_vm4, %v560_v42, 0.0 }
 0x10c   : > { %v553_v49 = vmax.f32 %v493_v40, 0.0  ;;  %v561_v50 = vmax.f32 %v525_v41, 0.0  ;;  %v580_v52 = vsel %vm569_vm4, %v555_v43, 0.0  ;;  %v616_v53 = vsel %vm569_vm4, %v563_v44, 0.0 }
 0x10d   : > { %v546_v54 = vadd.f32 %v1729_v46, %v2108_v22  ;;  %v505_v55 = vpop.f32.mrf.mxu0  ;;  %v537_v56 = vpop.f32.mrf.mxu1  ;;  %v581_v57 = vadd.f32 %v580_v52, %v579_v47  ;;  %v514_v60 = vadd.f32 %v1721_v45, %v2108_v22  ;;  %v617_v1 = vadd.f32 %v616_v53, %v615_v48 }
 0x10e   : > { %v571_v58 = vsel %vm569_vm4, %v553_v49, 0.0  ;;  %v607_v59 = vsel %vm569_vm4, %v561_v50, 0.0  ;;  %v506_v7 = vadd.f32 %v2108_v22, %v505_v55  ;;  %v538_v8 = vadd.f32 %v2108_v22, %v537_v56 }
 0x10f   : > { %v572_v62 = vadd.f32 %v571_v58, %v570_v51  ;;  %v1722_v63 = vpop.f32.mrf.mxu0  ;;  %v1730_v0 = vpop.f32.mrf.mxu1  ;;  %v608_v2 = vadd.f32 %v607_v59, %v606_v61  ;;  %v566_v4 = vmax.f32 %v546_v54, 0.0  ;;  %v582_v5 = vrot.slane %v581_v57, 4 }
 0x110   : > { %v558_v6 = vmax.f32 %v514_v60, 0.0  ;;  %v517_v9 = vadd.f32 %v1722_v63, %v2108_v22  ;;  %v549_v10 = vadd.f32 %v1730_v0, %v2108_v22  ;;  %v618_v13 = vrot.slane %v617_v1, 4 }
 0x111   : > { %v573_v3 = vrot.slane %v572_v62, 4  ;;  %v508_v11 = vpop.f32.mrf.mxu0  ;;  %v540_v12 = vpop.f32.mrf.mxu1  ;;  %v609_v14 = vrot.slane %v608_v2, 4  ;;  %v633_v16 = vsel %vm569_vm4, %v566_v4, 0.0  ;;  %v583_v19 = vadd.f32 %v582_v5, %v581_v57 }
 0x112   : > { %v559_v17 = vmax.f32 %v517_v9, 0.0  ;;  %v567_v18 = vmax.f32 %v549_v10, 0.0  ;;  %v597_v20 = vsel %vm569_vm4, %v558_v6, 0.0  ;;  %v509_v21 = vadd.f32 %v2108_v22, %v508_v11 }
 0x113   : > { %v574_v15 = vadd.f32 %v573_v3, %v572_v62  ;;  %v541_v23 = vadd.f32 %v2108_v22, %v540_v12  ;;  %v556_v24 = vmax.f32 %v506_v7, 0.0  ;;  %v564_v25 = vmax.f32 %v538_v8, 0.0 }
 0x114   : > { %v598_v26 = vsel %vm569_vm4, %v559_v17, 0.0  ;;  %v634_v27 = vsel %vm569_vm4, %v567_v18, 0.0  ;;  %v619_v30 = vadd.f32 %v618_v13, %v617_v1  ;;  %v557_v32 = vmax.f32 %v509_v21, 0.0 }
 0x115   : > { %v599_v28 = vadd.f32 %v598_v26, %v597_v20  ;;  %v635_v29 = vadd.f32 %v634_v27, %v633_v16  ;;  %v575_v31 = vrot.slane %v574_v15, 2  ;;  %v565_v33 = vmax.f32 %v541_v23, 0.0 }
 0x116   : > { %v584_v34 = vrot.slane %v583_v19, 2  ;;  %v610_v35 = vadd.f32 %v609_v14, %v608_v2  ;;  %v588_v38 = vsel %vm569_vm4, %v556_v24, 0.0  ;;  %v624_v22 = vsel %vm569_vm4, %v564_v25, 0.0 }
 0x117   : > { %v600_v36 = vrot.slane %v599_v28, 4  ;;  %v636_v37 = vrot.slane %v635_v29, 4  ;;  %v589_v39 = vsel %vm569_vm4, %v557_v32, 0.0  ;;  %v625_v40 = vsel %vm569_vm4, %v565_v33, 0.0 }
 0x118   : > { %v590_v42 = vadd.f32 %v589_v39, %v588_v38  ;;  %v626_v43 = vadd.f32 %v625_v40, %v624_v22  ;;  %v576_v44 = vadd.f32 %v575_v31, %v574_v15  ;;  %v611_v46 = vrot.slane %v610_v35, 2 }
 0x119   : > { %v601_v41 = vadd.f32 %v600_v36, %v599_v28  ;;  %v637_v45 = vadd.f32 %v636_v37, %v635_v29  ;;  %v585_v50 = vadd.f32 %v584_v34, %v583_v19  ;;  %v620_v51 = vrot.slane %v619_v30, 2  ;;  %v568_v19 = vld [vmem:[#allocation2] sm:$0xff] }
 0x11a   : > { %v591_v48 = vrot.slane %v590_v42, 4  ;;  %v627_v49 = vrot.slane %v626_v43, 4  ;;  %v577_v54 = vrot.slane %v576_v44, 1  ;;  %v612_v57 = vadd.f32 %v611_v46, %v610_v35 }
 0x11b   : > { %v602_v47 = vrot.slane %v601_v41, 2  ;;  %v638_v56 = vrot.slane %v637_v45, 2  ;;  %v586_v60 = vrot.slane %v585_v50, 1  ;;  %v621_v61 = vadd.f32 %v620_v51, %v619_v30 }
 0x11c   : > { %v592_v52 = vadd.f32 %v591_v48, %v590_v42  ;;  %v628_v53 = vadd.f32 %v627_v49, %v626_v43  ;;  %v578_v0 = vadd.f32 %v577_v54, %v576_v44  ;;  %v613_v3 = vrot.slane %v612_v57, 1 }
 0x11d   : > { %v603_v55 = vadd.f32 %v602_v47, %v601_v41  ;;  %v639_v2 = vadd.f32 %v638_v56, %v637_v45  ;;  %v587_v5 = vadd.f32 %v586_v60, %v585_v50  ;;  %v622_v6 = vrot.slane %v621_v61, 1 }
 0x11e   : > { %v593_v58 = vrot.slane %v592_v52, 2  ;;  %v629_v59 = vrot.slane %v628_v53, 2  ;;  %v614_v12 = vadd.f32 %v613_v3, %v612_v57 }
 0x11f   : > { %v604_v1 = vrot.slane %v603_v55, 1  ;;  %v651_v9 = vsel %vm650_vm5, %v587_v5, %v578_v0  ;;  %v640_v11 = vrot.slane %v639_v2, 1  ;;  %v623_v14 = vadd.f32 %v622_v6, %v621_v61 }
 0x120   : > { %v594_v62 = vadd.f32 %v593_v58, %v592_v52  ;;  %v630_v63 = vadd.f32 %v629_v59, %v628_v53 }
 0x121   : > { %v605_v10 = vadd.f32 %v604_v1, %v603_v55  ;;  %v641_v18 = vadd.f32 %v640_v11, %v639_v2 }
 0x122   : > { %v595_v4 = vrot.slane %v594_v62, 1  ;;  %v631_v8 = vrot.slane %v630_v63, 1 }
 0x124   : > { %v596_v7 = vadd.f32 %v595_v4, %v594_v62  ;;  %v632_v16 = vadd.f32 %v631_v8, %v630_v63 }
 0x126   : > { %v653_v13 = vsel %vm652_vm6, %v596_v7, %v651_v9 }
 0x127   : > { %v655_v15 = vsel %vm654_vm7, %v605_v10, %v653_v13 }
 0x128   : > { %v657_v17 = vsel %vm656_vm8, %v614_v12, %v655_v15 }
 0x129   : > { %v659_v20 = vsel %vm658_vm9, %v623_v14, %v657_v17 }
 0x12a   : > { %v661_v21 = vsel %vm660_vm10, %v632_v16, %v659_v20  ;;  %670 = sbr.rel (%p1624_p4) target bundleno = 570 (0x23a), region = 89 }
 0x12b   : > { %v663_v23 = vsel %vm662_vm11, %v641_v18, %v661_v21 }
 0x12c   : > { %v665_v24 = vadd.f32 %v663_v23, %v568_v19 }
 0x12e   : > { %666 = vst.msk [vmem:[#allocation2] sm:$0xff] %vm569_vm4, %v665_v24 }
 0x12f   : > { %v732_v25 = vld [vmem:[%s2458_s3 + $0x180] sm:$0xff]  ;;  %v733_v27 = vld [vmem:[%s2458_s3 + $0x188] sm:$0xff]  ;;  %v676_v28 = vlaneseq  ;;  %v1944_v34 = vmov 0   ;;  %v734_v63 = vld [vmem:[%s2458_s3 + $0x190] sm:$0xff] }
 0x130   : > { %v740_v26 = vld [vmem:[%s2458_s3 + $0x1c0] sm:$0xff]  ;;  %v741_v30 = vld [vmem:[%s2458_s3 + $0x1c8] sm:$0xff]  ;;  %1187 = vmatprep.mubr.bf16.mxu0 %v1944_v34  ;;  %1228 = vmatprep.mubr.bf16.mxu1 %v1944_v34  ;;  %v742_v0 = vld [vmem:[%s2458_s3 + $0x1d0] sm:$0xff] }
 0x131   : > { %v1674_v29 = vcombine.high %v732_v25, %v740_v26  ;;  %v1673_v31 = vcombine.low %v732_v25, %v740_v26  ;;  %v716_v32 = vld [vmem:[%s2458_s3 + $0x100] sm:$0xff]  ;;  %v1676_v35 = vcombine.high %v733_v27, %v741_v30  ;;  %v1675_v36 = vcombine.low %v733_v27, %v741_v30  ;;  %v717_v38 = vld [vmem:[%s2458_s3 + $0x108] sm:$0xff]  ;;  %v735_v1 = vld [vmem:[%s2458_s3 + $0x198] sm:$0xff] }
 0x132   : > { %v724_v33 = vld [vmem:[%s2458_s3 + $0x140] sm:$0xff]  ;;  %v725_v22 = vld [vmem:[%s2458_s3 + $0x148] sm:$0xff]  ;;  %v2182_v44 = vshrl.u32 %v676_v28, 7  ;;  %v743_v2 = vld [vmem:[%s2458_s3 + $0x1d8] sm:$0xff]  ;;  %v1678_v6 = vcombine.high %v734_v63, %v742_v0  ;;  %v1677_v14 = vcombine.low %v734_v63, %v742_v0 }
 0x133   : > { %v1658_v37 = vcombine.high %v716_v32, %v724_v33  ;;  %v700_v39 = vld [vmem:[%s2458_s3 + $0x80] sm:$0xff]  ;;  %1163 = vmatprep.subr.bf16.mxu0 %v1674_v29  ;;  %v1660_v40 = vcombine.high %v717_v38, %v725_v22  ;;  %v701_v42 = vld [vmem:[%s2458_s3 + $0x88] sm:$0xff]  ;;  %1204 = vmatprep.subr.bf16.mxu1 %v1676_v35  ;;  %v1657_v45 = vcombine.low %v716_v32, %v724_v33  ;;  %v718_v9 = vld [vmem:[%s2458_s3 + $0x110] sm:$0xff] }
 0x134   : > { %v708_v41 = vld [vmem:[%s2458_s3 + $0xc0] sm:$0xff]  ;;  %v709_v43 = vld [vmem:[%s2458_s3 + $0xc8] sm:$0xff]  ;;  %1164 = vmatpush1.bf16.msra.mxu0 %v1673_v31  ;;  %1205 = vmatpush1.bf16.msra.mxu1 %v1675_v36  ;;  %v1659_v46 = vcombine.low %v717_v38, %v725_v22  ;;  %v2194_v53 = vsub.s32 0, %v2182_v44  ;;  %v1680_v8 = vcombine.high %v735_v1, %v743_v2  ;;  %v726_v10 = vld [vmem:[%s2458_s3 + $0x150] sm:$0xff]  ;;  %v1679_v15 = vcombine.low %v735_v1, %v743_v2 }
 0x135   : > { %1165 = vmatprep.subr.bf16.mxu0 %v1658_v37  ;;  %v1642_v47 = vcombine.high %v700_v39, %v708_v41  ;;  %v672_v48 = vld [vmem:[%s2457_s2] sm:$0x1]  ;;  %1206 = vmatprep.subr.bf16.mxu1 %v1660_v40  ;;  %v1644_v49 = vcombine.high %v701_v42, %v709_v43  ;;  %v685_v54 = vld [vmem:[%s2458_s3 + $0x8] sm:$0xff]  ;;  %v1641_v56 = vcombine.low %v700_v39, %v708_v41  ;;  %v719_v11 = vld [vmem:[%s2458_s3 + $0x118] sm:$0xff] }
 0x136   : > { %v684_v50 = vld [vmem:[%s2458_s3] sm:$0xff]  ;;  %v673_v52 = vmax.f32 %v672_v48, 0.0  ;;  %v693_v55 = vld [vmem:[%s2458_s3 + $0x48] sm:$0xff]  ;;  %v1643_v58 = vcombine.low %v701_v42, %v709_v43  ;;  %v727_v12 = vld [vmem:[%s2458_s3 + $0x158] sm:$0xff]  ;;  %v1662_v16 = vcombine.high %v718_v9, %v726_v10  ;;  %v1661_v23 = vcombine.low %v718_v9, %v726_v10 }
 0x137   : > { %v692_v51 = vld [vmem:[%s2458_s3 + $0x40] sm:$0xff]  ;;  %v1628_v61 = vcombine.high %v685_v54, %v693_v55  ;;  %v1627_v5 = vcombine.low %v685_v54, %v693_v55  ;;  %v1664_v17 = vcombine.high %v719_v11, %v727_v12  ;;  %v702_v18 = vld [vmem:[%s2458_s3 + $0x90] sm:$0xff]  ;;  %v703_v20 = vld [vmem:[%s2458_s3 + $0x98] sm:$0xff]  ;;  %v1663_v24 = vcombine.low %v719_v11, %v727_v12 }
 0x138   : > { %1166 = vmatpush1.bf16.msra.mxu0 %v1657_v45  ;;  %v674_v57 = vmul.f32 15.0, %v673_v52  ;;  %1207 = vmatpush1.bf16.msra.mxu1 %v1659_v46  ;;  %v1626_v59 = vcombine.high %v684_v50, %v692_v51  ;;  %v671_v60 = vld [vmem:[#allocation2] sm:$0xff]  ;;  %v1625_v3 = vcombine.low %v684_v50, %v692_v51  ;;  %v710_v19 = vld [vmem:[%s2458_s3 + $0xd0] sm:$0xff]  ;;  %v711_v21 = vld [vmem:[%s2458_s3 + $0xd8] sm:$0xff] }
 0x139   : > { %1167 = vmatprep.subr.bf16.mxu0 %v1642_v47  ;;  %1208 = vmatprep.subr.bf16.mxu1 %v1644_v49  ;;  %v1646_v25 = vcombine.high %v702_v18, %v710_v19  ;;  %v1648_v26 = vcombine.high %v703_v20, %v711_v21  ;;  %v686_v27 = vld [vmem:[%s2458_s3 + $0x10] sm:$0xff]  ;;  %v687_v29 = vld [vmem:[%s2458_s3 + $0x18] sm:$0xff]  ;;  %v1645_v31 = vcombine.low %v702_v18, %v710_v19  ;;  %v736_v36 = vld [vmem:[%s2458_s3 + $0x1a0] sm:$0xff] }
 0x13a   : > { %v679_v62 = vrot.slane %v674_v57, %v2194_v53  ;;  %v694_v28 = vld [vmem:[%s2458_s3 + $0x50] sm:$0xff]  ;;  %v695_v30 = vld [vmem:[%s2458_s3 + $0x58] sm:$0xff]  ;;  %v1647_v32 = vcombine.low %v703_v20, %v711_v21  ;;  %v744_v37 = vld [vmem:[%s2458_s3 + $0x1e0] sm:$0xff] }
 0x13b   : > { %v1630_v33 = vcombine.high %v686_v27, %v694_v28  ;;  %v1632_v35 = vcombine.high %v687_v29, %v695_v30  ;;  %v737_v38 = vld [vmem:[%s2458_s3 + $0x1a8] sm:$0xff]  ;;  %v1629_v39 = vcombine.low %v686_v27, %v694_v28  ;;  %v1631_v40 = vcombine.low %v687_v29, %v695_v30  ;;  %v720_v43 = vld [vmem:[%s2458_s3 + $0x120] sm:$0xff] }
 0x13c   : > { %1168 = vmatpush1.bf16.msra.mxu0 %v1641_v56  ;;  %v681_v4 = vsub.f32 %v671_v60, %v679_v62  ;;  %1209 = vmatpush1.bf16.msra.mxu1 %v1643_v58  ;;  %v745_v22 = vld [vmem:[%s2458_s3 + $0x1e8] sm:$0xff]  ;;  %v1682_v41 = vcombine.high %v736_v36, %v744_v37  ;;  %v728_v45 = vld [vmem:[%s2458_s3 + $0x160] sm:$0xff]  ;;  %v1681_v48 = vcombine.low %v736_v36, %v744_v37 }
 0x13d   : > { %1169 = vmatprep.subr.bf16.mxu0 %v1626_v59  ;;  %1210 = vmatprep.subr.bf16.mxu1 %v1628_v61  ;;  %v1684_v42 = vcombine.high %v737_v38, %v745_v22  ;;  %v721_v46 = vld [vmem:[%s2458_s3 + $0x128] sm:$0xff]  ;;  %v1683_v49 = vcombine.low %v737_v38, %v745_v22  ;;  %v1666_v50 = vcombine.high %v720_v43, %v728_v45  ;;  %v704_v52 = vld [vmem:[%s2458_s3 + $0xa0] sm:$0xff] }
 0x13e   : > { %v682_v7 = vmul.f32 0.020408163, %v681_v4  ;;  %v729_v47 = vld [vmem:[%s2458_s3 + $0x168] sm:$0xff]  ;;  %v712_v54 = vld [vmem:[%s2458_s3 + $0xe0] sm:$0xff]  ;;  %v1665_v57 = vcombine.low %v720_v43, %v728_v45  ;;  %v766_v43 = vsub.s32 3, %v2182_v44 }
 0x13f   : > { %v1668_v51 = vcombine.high %v721_v46, %v729_v47  ;;  %v705_v55 = vld [vmem:[%s2458_s3 + $0xa8] sm:$0xff]  ;;  %v1667_v58 = vcombine.low %v721_v46, %v729_v47  ;;  %v1650_v59 = vcombine.high %v704_v52, %v712_v54  ;;  %v688_v61 = vld [vmem:[%s2458_s3 + $0x20] sm:$0xff]  ;;  %v1649_v1 = vcombine.low %v704_v52, %v712_v54 }
 0x140   : > { %1170 = vmatpush1.bf16.msra.mxu0 %v1625_v3  ;;  %v2227_v13 = vpack.c.bf16 %v682_v7, %v682_v7  ;;  %1211 = vmatpush1.bf16.msra.mxu1 %v1627_v5  ;;  %v713_v56 = vld [vmem:[%s2458_s3 + $0xe8] sm:$0xff]  ;;  %v696_v62 = vld [vmem:[%s2458_s3 + $0x60] sm:$0xff]  ;;  %v738_v5 = vld [vmem:[%s2458_s3 + $0x1b0] sm:$0xff] }
 0x141   : > { %1245 = vmatprep.subr.bf16.mxu0 %v1678_v6  ;;  %1286 = vmatprep.subr.bf16.mxu1 %v1680_v8  ;;  %v1652_v60 = vcombine.high %v705_v55, %v713_v56  ;;  %v689_v63 = vld [vmem:[%s2458_s3 + $0x28] sm:$0xff]  ;;  %v1651_v2 = vcombine.low %v705_v55, %v713_v56  ;;  %v1634_v3 = vcombine.high %v688_v61, %v696_v62  ;;  %v746_v6 = vld [vmem:[%s2458_s3 + $0x1f0] sm:$0xff]  ;;  %v739_v7 = vld [vmem:[%s2458_s3 + $0x1b8] sm:$0xff] }
 0x142   : > { %v697_v0 = vld [vmem:[%s2458_s3 + $0x68] sm:$0xff]  ;;  %v747_v8 = vld [vmem:[%s2458_s3 + $0x1f8] sm:$0xff]  ;;  %v1633_v9 = vcombine.low %v688_v61, %v696_v62  ;;  %v1686_v11 = vcombine.high %v738_v5, %v746_v6  ;;  %v1685_v18 = vcombine.low %v738_v5, %v746_v6  ;;  %v770_v61 = vsub.s32 4, %v2182_v44 }
 0x143   : > { %1689 = vmatmul.mubr.msk.bf16.vlgmr.msra.gmra.mxu0 %vm569_vm4, %v2227_v13  ;;  %1690 = vmatmul.mubr.msk.bf16.vlgmr.msra.gmra.mxu1 %vm569_vm4, %v2227_v13  ;;  %v1636_v4 = vcombine.high %v689_v63, %v697_v0  ;;  %v1635_v10 = vcombine.low %v689_v63, %v697_v0  ;;  %v1688_v12 = vcombine.high %v739_v7, %v747_v8  ;;  %v778_v62 = vsub.s32 6, %v2182_v44 }
 0x144   : > { %1246 = vmatpush1.bf16.msra.mxu0 %v1677_v14  ;;  %1287 = vmatpush1.bf16.msra.mxu1 %v1679_v15  ;;  %v722_v14 = vld [vmem:[%s2458_s3 + $0x130] sm:$0xff]  ;;  %v1687_v19 = vcombine.low %v739_v7, %v747_v8  ;;  %v774_v63 = vsub.s32 5, %v2182_v44  ;;  %v782_v0 = vsub.s32 7, %v2182_v44 }
 0x145   : > { %1247 = vmatprep.subr.bf16.mxu0 %v1662_v16  ;;  %1288 = vmatprep.subr.bf16.mxu1 %v1664_v17  ;;  %v730_v15 = vld [vmem:[%s2458_s3 + $0x170] sm:$0xff]  ;;  %v723_v16 = vld [vmem:[%s2458_s3 + $0x138] sm:$0xff] }
 0x146   : > { %1269 = vmatprep.mubr.bf16.mxu0 %v1944_v34  ;;  %1310 = vmatprep.mubr.bf16.mxu1 %v1944_v34  ;;  %v731_v17 = vld [vmem:[%s2458_s3 + $0x178] sm:$0xff]  ;;  %v1670_v20 = vcombine.high %v722_v14, %v730_v15  ;;  %v1669_v27 = vcombine.low %v722_v14, %v730_v15 }
 0x147   : > { %v1672_v21 = vcombine.high %v723_v16, %v731_v17  ;;  %v1671_v28 = vcombine.low %v723_v16, %v731_v17  ;;  %v749_v17 = vld [vmem:[%s2459_s4 + $0x8] sm:$0xff] }
 0x148   : > { %1248 = vmatpush1.bf16.msra.mxu0 %v1661_v23  ;;  %1289 = vmatpush1.bf16.msra.mxu1 %v1663_v24  ;;  %v706_v23 = vld [vmem:[%s2458_s3 + $0xb0] sm:$0xff] }
 0x149   : > { %1249 = vmatprep.subr.bf16.mxu0 %v1646_v25  ;;  %1290 = vmatprep.subr.bf16.mxu1 %v1648_v26  ;;  %v714_v24 = vld [vmem:[%s2458_s3 + $0xf0] sm:$0xff]  ;;  %v707_v25 = vld [vmem:[%s2458_s3 + $0xb8] sm:$0xff] }
 0x14a   : > { %v715_v26 = vld [vmem:[%s2458_s3 + $0xf8] sm:$0xff]  ;;  %v1654_v29 = vcombine.high %v706_v23, %v714_v24  ;;  %v1653_v36 = vcombine.low %v706_v23, %v714_v24  ;;  %v799_v23 = vrot.slane %v749_v17, %v766_v43 }
 0x14b   : > { %v1656_v30 = vcombine.high %v707_v25, %v715_v26  ;;  %v1655_v37 = vcombine.low %v707_v25, %v715_v26 }
 0x14c   : > { %1250 = vmatpush1.bf16.msra.mxu0 %v1645_v31  ;;  %1291 = vmatpush1.bf16.msra.mxu1 %v1647_v32  ;;  %v690_v31 = vld [vmem:[%s2458_s3 + $0x30] sm:$0xff] }
 0x14d   : > { %1251 = vmatprep.subr.bf16.mxu0 %v1630_v33  ;;  %1292 = vmatprep.subr.bf16.mxu1 %v1632_v35  ;;  %v698_v32 = vld [vmem:[%s2458_s3 + $0x70] sm:$0xff]  ;;  %v691_v33 = vld [vmem:[%s2458_s3 + $0x38] sm:$0xff] }
 0x14e   : > { %v699_v35 = vld [vmem:[%s2458_s3 + $0x78] sm:$0xff]  ;;  %v1638_v38 = vcombine.high %v690_v31, %v698_v32 }
 0x14f   : > { %v1640_v22 = vcombine.high %v691_v33, %v699_v35 }
 0x150   : > { %1252 = vmatpush1.bf16.msra.mxu0 %v1629_v39  ;;  %1293 = vmatpush1.bf16.msra.mxu1 %v1631_v40  ;;  %v1637_v39 = vcombine.low %v690_v31, %v698_v32  ;;  %v1639_v40 = vcombine.low %v691_v33, %v699_v35  ;;  %v803_v35 = vrot.slane %v749_v17, %v770_v61 }
 0x151   : > { %1327 = vmatprep.subr.bf16.mxu0 %v1682_v41  ;;  %1368 = vmatprep.subr.bf16.mxu1 %v1684_v42  ;;  %v762_v41 = vsub.s32 2, %v2182_v44  ;;  %v758_v42 = vsub.s32 1, %v2182_v44 }
 0x153   : > { %1691 = vmatmul.mubr.msk.bf16.vlgmr.msra.gmra.mxu0 %vm569_vm4, %v2227_v13  ;;  %1692 = vmatmul.mubr.msk.bf16.vlgmr.msra.gmra.mxu1 %vm569_vm4, %v2227_v13 }
 0x154   : > { %1328 = vmatpush1.bf16.msra.mxu0 %v1681_v48  ;;  %1369 = vmatpush1.bf16.msra.mxu1 %v1683_v49 }
 0x155   : > { %1329 = vmatprep.subr.bf16.mxu0 %v1666_v50  ;;  %1370 = vmatprep.subr.bf16.mxu1 %v1668_v51 }
 0x156   : > { %1351 = vmatprep.mubr.bf16.mxu0 %v1944_v34  ;;  %1392 = vmatprep.mubr.bf16.mxu1 %v1944_v34 }
 0x158   : > { %1330 = vmatpush1.bf16.msra.mxu0 %v1665_v57  ;;  %1371 = vmatpush1.bf16.msra.mxu1 %v1667_v58 }
 0x159   : > { %1331 = vmatprep.subr.bf16.mxu0 %v1650_v59  ;;  %1372 = vmatprep.subr.bf16.mxu1 %v1652_v60 }
 0x15c   : > { %1332 = vmatpush1.bf16.msra.mxu0 %v1649_v1  ;;  %1373 = vmatpush1.bf16.msra.mxu1 %v1651_v2 }
 0x15d   : > { %1333 = vmatprep.subr.bf16.mxu0 %v1634_v3  ;;  %1374 = vmatprep.subr.bf16.mxu1 %v1636_v4 }
 0x160   : > { %1334 = vmatpush1.bf16.msra.mxu0 %v1633_v9  ;;  %1375 = vmatpush1.bf16.msra.mxu1 %v1635_v10 }
 0x161   : > { %1409 = vmatprep.subr.bf16.mxu0 %v1686_v11  ;;  %1450 = vmatprep.subr.bf16.mxu1 %v1688_v12 }
 0x163   : > { %1693 = vmatmul.mubr.msk.bf16.vlgmr.msra.gmra.mxu0 %vm569_vm4, %v2227_v13  ;;  %1694 = vmatmul.mubr.msk.bf16.vlgmr.msra.gmra.mxu1 %vm569_vm4, %v2227_v13 }
 0x164   : > { %1410 = vmatpush1.bf16.msra.mxu0 %v1685_v18  ;;  %1451 = vmatpush1.bf16.msra.mxu1 %v1687_v19  ;;  %v787_v18 = vrot.slane %v749_v17, %v2194_v53  ;;  %v795_v19 = vrot.slane %v749_v17, %v762_v41 }
 0x165   : > { %1411 = vmatprep.subr.bf16.mxu0 %v1670_v20  ;;  %1452 = vmatprep.subr.bf16.mxu1 %v1672_v21  ;;  %v791_v20 = vrot.slane %v749_v17, %v758_v42 }
 0x166   : > { %1433 = vmatprep.mubr.bf16.mxu0 %v1944_v34  ;;  %1474 = vmatprep.mubr.bf16.mxu1 %v1944_v34  ;;  %v748_v34 = vld [vmem:[%s2459_s4] sm:$0xff] }
 0x167   : > { %v755_v45 = vrot.slane %v748_v34, %v2194_v53  ;;  %v763_v46 = vrot.slane %v748_v34, %v762_v41  ;;  %v759_v47 = vrot.slane %v748_v34, %v758_v42  ;;  %v767_v49 = vrot.slane %v748_v34, %v766_v43 }
 0x168   : > { %1412 = vmatpush1.bf16.msra.mxu0 %v1669_v27  ;;  %1453 = vmatpush1.bf16.msra.mxu1 %v1671_v28  ;;  %v771_v1 = vrot.slane %v748_v34, %v770_v61  ;;  %v779_v2 = vrot.slane %v748_v34, %v778_v62  ;;  %v775_v3 = vrot.slane %v748_v34, %v774_v63 }
 0x169   : > { %1413 = vmatprep.subr.bf16.mxu0 %v1654_v29  ;;  %1454 = vmatprep.subr.bf16.mxu1 %v1656_v30  ;;  %v783_v5 = vrot.slane %v748_v34, %v782_v0 }
 0x16c   : > { %1414 = vmatpush1.bf16.msra.mxu0 %v1653_v36  ;;  %1455 = vmatpush1.bf16.msra.mxu1 %v1655_v37  ;;  %v811_v36 = vrot.slane %v749_v17, %v778_v62  ;;  %v807_v37 = vrot.slane %v749_v17, %v774_v63 }
 0x16d   : > { %1415 = vmatprep.subr.bf16.mxu0 %v1638_v38  ;;  %1456 = vmatprep.subr.bf16.mxu1 %v1640_v22  ;;  %v815_v22 = vrot.slane %v749_v17, %v782_v0 }
 0x170   : > { %1416 = vmatpush1.bf16.msra.mxu0 %v1637_v39  ;;  %1457 = vmatpush1.bf16.msra.mxu1 %v1639_v40 }
 0x173   : > { %1695 = vmatmul.mubr.msk.bf16.vlgmr.msra.gmra.mxu0 %vm569_vm4, %v2227_v13  ;;  %1696 = vmatmul.mubr.msk.bf16.vlgmr.msra.gmra.mxu1 %vm569_vm4, %v2227_v13 }
 0x203   : > { %v1189_v48 = vpop.f32.mrf.mxu0  ;;  %v1230_v50 = vpop.f32.mrf.mxu1 }
 0x204   : > { %v1190_v13 = vadd.f32 %v1189_v48, %v755_v45  ;;  %v1231_v51 = vadd.f32 %v1230_v50, %v763_v46 }
 0x205   : > { %v1191_v52 = vpop.f32.mrf.mxu0  ;;  %v1232_v55 = vpop.f32.mrf.mxu1 }
 0x206   : > { %1483 = vst [vmem:[%s2083_s8] sm:$0xff] %v1190_v13  ;;  %v1192_v54 = vadd.f32 %v1191_v52, %v759_v47  ;;  %1485 = vst [vmem:[%s2083_s8 + $0x10] sm:$0xff] %v1231_v51  ;;  %v1233_v56 = vadd.f32 %v1232_v55, %v767_v49 }
 0x207   : > { %v1193_v57 = vpop.f32.mrf.mxu0  ;;  %v1234_v58 = vpop.f32.mrf.mxu1 }
 0x208   : > { %1484 = vst [vmem:[%s2083_s8 + $0x8] sm:$0xff] %v1192_v54  ;;  %1486 = vst [vmem:[%s2083_s8 + $0x18] sm:$0xff] %v1233_v56 }
 0x209   : > { %v1194_v59 = vpop.f32.mrf.mxu0  ;;  %v1235_v60 = vpop.f32.mrf.mxu1 }
 0x213   : > { %v1271_v4 = vpop.f32.mrf.mxu0  ;;  %v1312_v7 = vpop.f32.mrf.mxu1 }
 0x214   : > { %v1272_v6 = vadd.f32 %v1271_v4, %v771_v1  ;;  %v1313_v8 = vadd.f32 %v1312_v7, %v779_v2 }
 0x215   : > { %v1273_v9 = vpop.f32.mrf.mxu0  ;;  %v1314_v11 = vpop.f32.mrf.mxu1 }
 0x216   : > { %1487 = vst [vmem:[%s2083_s8 + $0x20] sm:$0xff] %v1272_v6  ;;  %v1274_v10 = vadd.f32 %v1273_v9, %v775_v3  ;;  %1489 = vst [vmem:[%s2083_s8 + $0x30] sm:$0xff] %v1313_v8  ;;  %v1315_v12 = vadd.f32 %v1314_v11, %v783_v5 }
 0x217   : > { %v1275_v14 = vpop.f32.mrf.mxu0  ;;  %v1316_v44 = vpop.f32.mrf.mxu1 }
 0x218   : > { %1488 = vst [vmem:[%s2083_s8 + $0x28] sm:$0xff] %v1274_v10  ;;  %1490 = vst [vmem:[%s2083_s8 + $0x38] sm:$0xff] %v1315_v12 }
 0x219   : > { %v1276_v15 = vpop.f32.mrf.mxu0  ;;  %v1317_v16 = vpop.f32.mrf.mxu1 }
 0x223   : > { %v1353_v21 = vpop.f32.mrf.mxu0  ;;  %v1394_v25 = vpop.f32.mrf.mxu1 }
 0x224   : > { %v1354_v24 = vadd.f32 %v1353_v21, %v787_v18  ;;  %v1395_v26 = vadd.f32 %v1394_v25, %v795_v19 }
 0x225   : > { %v1355_v27 = vpop.f32.mrf.mxu0  ;;  %v1396_v29 = vpop.f32.mrf.mxu1 }
 0x226   : > { %1491 = vst [vmem:[%s2083_s8 + $0x40] sm:$0xff] %v1354_v24  ;;  %v1356_v28 = vadd.f32 %v1355_v27, %v791_v20  ;;  %1493 = vst [vmem:[%s2083_s8 + $0x50] sm:$0xff] %v1395_v26  ;;  %v1397_v30 = vadd.f32 %v1396_v29, %v799_v23 }
 0x227   : > { %v1357_v31 = vpop.f32.mrf.mxu0  ;;  %v1398_v32 = vpop.f32.mrf.mxu1 }
 0x228   : > { %1492 = vst [vmem:[%s2083_s8 + $0x48] sm:$0xff] %v1356_v28  ;;  %1494 = vst [vmem:[%s2083_s8 + $0x58] sm:$0xff] %v1397_v30 }
 0x229   : > { %v1358_v53 = vpop.f32.mrf.mxu0  ;;  %v1399_v33 = vpop.f32.mrf.mxu1 }
 0x233   : > { %v1435_v38 = vpop.f32.mrf.mxu0  ;;  %v1476_v40 = vpop.f32.mrf.mxu1 }
 0x234   : > { %v1436_v39 = vadd.f32 %v1435_v38, %v803_v35  ;;  %v1477_v34 = vadd.f32 %v1476_v40, %v811_v36 }
 0x235   : > { %v1437_v41 = vpop.f32.mrf.mxu0  ;;  %v1478_v43 = vpop.f32.mrf.mxu1 }
 0x236   : > { %1495 = vst [vmem:[%s2083_s8 + $0x60] sm:$0xff] %v1436_v39  ;;  %v1438_v42 = vadd.f32 %v1437_v41, %v807_v37  ;;  %1497 = vst [vmem:[%s2083_s8 + $0x70] sm:$0xff] %v1477_v34  ;;  %v1479_v45 = vadd.f32 %v1478_v43, %v815_v22 }
 0x237   : > { %v1439_v46 = vpop.f32.mrf.mxu0  ;;  %v1480_v47 = vpop.f32.mrf.mxu1 }
 0x238   : > { %1496 = vst [vmem:[%s2083_s8 + $0x68] sm:$0xff] %v1438_v42  ;;  %1498 = vst [vmem:[%s2083_s8 + $0x78] sm:$0xff] %v1479_v45 }
 0x239   : > { %v1440_v48 = vpop.f32.mrf.mxu0  ;;  %v1481_v49 = vpop.f32.mrf.mxu1 }
 0x23a PF: > { %s1703_s6 = sshll.u32 %s1928_s24, 11  ;;  %s1514_s30 = sshll.u32 %s2083_s8, 4  ;;  %s1515_s30 = int_to_ptr.vmem [resolvable:$true] %s1514_s30 }
 0x23b   : > { %s1512_s29 = scalar_lea.hbm %s2460_s5, %s1703_s6  ;;  %s1500_s12 = scalar_lea.sflag [#allocation5], %s341_s9 }
 0x23c   : > { %s1832_s23 = scalar_lea.vmem %s1515_s30, 2048  ;;  %s1945_s21 = smov [#allocation4]  }
 0x23d   : > { %p1833_p5 = scmp.ne.s32.totalorder %s1515_s30, %s1832_s23  ;;  %s1836_s13 = sshll.u32 %s1945_s21, 4  ;;  %s1837_s13 = int_to_ptr.vmem [resolvable:$false] %s1836_s13 }
 0x23e   : > { %s1838_s10 = scalar_lea.vmem %s1837_s13, 4096  ;;  %p1839_p9 = scmp.lt.s32.totalorder %s1515_s30, %s1837_s13 }
 0x23f   : > { %p1834_p6 = pnand %p1833_p5, %p2048_p7  ;;  %p1840_p10 = scmp.lt.s32.totalorder %s1838_s10, %s1832_s23 }
 0x241   : > { %p1835_p8 = pneg %p1834_p6  ;;  %p1841_p11 = por %p1840_p10, %p1839_p9 }
 0x243   : > { %p1842_p13 = pnand %p1841_p11, %p1835_p8 }
 0x245   : > { %1845 = shalt.err (!%p1842_p13)
}
 0x246   : > { %s1846_s24 = scalar_lea.hbm %s1512_s29, 2048  ;;  %s1850_s7 = scalar_lea.hbm %s2460_s5, 4096 }
 0x247   : > { %p1847_p0 = scmp.ne.s32.totalorder %s1512_s29, %s1846_s24  ;;  %p1851_p3 = scmp.lt.s32.totalorder %s1512_s29, %s2460_s5 }
 0x248   : > { %p1852_p4 = scmp.lt.s32.totalorder %s1850_s7, %s1846_s24 }
 0x249   : > { %p1848_p1 = pnand %p1847_p0, %p2048_p7 }
 0x24a   : > { %p1853_p5 = por %p1852_p4, %p1851_p3 }
 0x24b   : > { %p1849_p2 = pneg %p1848_p1 }
 0x24d   : > { %p1854_p6 = pnand %p1853_p5, %p1849_p2 }
 0x24f   : > { %1857 = shalt.err (!%p1854_p6)
}
 0x250   : > { %1733 = dma.vmem_to_hbm [thread:$0]  (%p2048_p7), %s1515_s30, 2048, %s1512_s29, %s1500_s12  }
 0x251 PF: > { %p1739_p8 = scmp.ge.s32.totalorder %s1940_s27, 2  ;;  %s1526_s28 = sand.u32 1, %s1904_s18  }
 0x252   : > { %s1527_s23 = scalar_lea.sflag [#allocation5], %s1526_s28 }
 0x253   : > { %p1736_p9 = pnand %p1739_p8, %p2056_p12 }
 0x255   : > { %p1737_p10 = pneg %p1736_p9 }
 0x257   : > { %1899 = dma.done.wait (%p1737_p10), %s1527_s23, 2048  }
 0x258   : > { %1901 = vsyncadd (%p1737_p10), %s1527_s23, 4294965248  ;;  %s18_s27 = sadd.s32 1, %s1940_s27   ;;  %s2468_s11 = sld [smem:[#allocation7_spill]] }
 0x259   : > { %p15_p11 = scmp.ge.s32.totalorder %s18_s27, 10   ;;  %s2469_s29 = sld [smem:[#allocation8_spill]] }
 0x25a   : > { %s2470_s18 = smov %s1908_s19  ;;  %s2471_s19 = smov %s1912_s20 }
 0x25b   : > { %s2472_s20 = smov %s2061_s15  ;;  %s2473_s21 = smov %s1920_s22 }
 0x25c   : > { %s2474_s22 = smov %s2064_s16  ;;  %s2475_s23 = smov %s1932_s25 }
 0x25d   : > { %s2476_s24 = smov %s1936_s26  ;;  %17 = sbr.rel (!%p15_p11) target bundleno = 6 (0x6), region = 129 }
 0x25e   : > { %s2477_s25 = smov %s2468_s11 }
 0x25f   : > { %s2478_s26 = smov %s2469_s29 }
 0x262   :  { %1532 = vsyncpa [#allocation5], 1 }
 0x263   :  { %1534 = vsyncpa [#allocation5 + $0x1], 1 }

</bundles_post_ra>
